<compile_context>
chip_gen: v7x
topology: tpu7x:2x2x1
jax: 0.10.0
libtpu: 0.0.40
codegen_flags: <defaults>
</compile_context>

<pallas_src>
import functools

import jax
import jax.numpy as jnp
from jax.experimental import pallas as pl
from jax.experimental.pallas import tpu as pltpu

FACTOR = 2.5                      # deterministic "parameter" (self.factor)
LANE = 128
MIN_GRID = 8                      # >= ~4 blocks per TC on v7x (2 TCs)
TINY_BYPASS_ELEMS = 64 * 1024     # below this, plain XLA elementwise wins
DEFAULT_BLOCK_BYTES = 4 * 1024 * 1024


def _scaled_tanh_kernel(x_ref, o_ref, *, factor):
    # EUP tanh + VPU mul; python-float factor keeps the input dtype (bf16
    # stays bf16, v5e's implicit bf16->f32 upcast hides under the DMA).
    o_ref[...] = (jnp.tanh(x_ref[...]) * factor).astype(o_ref.dtype)


def _min_sublane(dtype) -> int:
    # Minimum second-to-last tile dim: f32 -> 8, bf16/f16 -> 16, int8/fp8 -> 32
    # (sub-32-bit dtypes pack along sublanes).
    return max(8, 32 // jnp.dtype(dtype).itemsize)


def _pick_width(n: int, sub: int):
    # Widest lane-dense width (multiple of 128) that divides n exactly AND
    # leaves at least `sub` rows so native (8,128) vreg tiles stay full.
    for w in (8192, 4096, 2048, 1024, 512, 256, 128):
        if n % w == 0 and n // w >= sub:
            return w
    return None


def _scaled_tanh_2d(x2d: jax.Array, factor: float, target_block_bytes: int) -> jax.Array:
    rows, width = x2d.shape
    dtype = x2d.dtype
    itemsize = jnp.dtype(dtype).itemsize
    sub = _min_sublane(dtype)
    bytes_per_row = width * itemsize

    # Rows per block: as big as the byte target allows ...
    br_cap = max(sub, (target_block_bytes // bytes_per_row) // sub * sub)
    # ... but split into >= MIN_GRID blocks when possible so each v7x core
    # gets several blocks (pipelining + load balance).
    br_grid = max(sub, (rows // MIN_GRID) // sub * sub)
    br = min(br_cap, br_grid)
    if br >= rows:
        br = rows            # block dim == full array dim: always legal
    grid_rows = pl.cdiv(rows, br)    # ragged last block handled by Pallas

    block_bytes = br * width * itemsize
    # in + out, double-buffered, plus headroom.  Explicit so 4 MiB blocks do
    # not trip v5e's 16 MiB scoped-VMEM default; well under v7x's 64 MiB VMEM.
    vmem_limit = min(64 * 1024 * 1024,
                     max(16 * 1024 * 1024, 4 * block_bytes + (4 << 20)))

    return pl.pallas_call(
        functools.partial(_scaled_tanh_kernel, factor=factor),
        out_shape=jax.ShapeDtypeStruct((rows, width), dtype),
        grid_spec=pl.GridSpec(
            grid=(grid_rows,),
            in_specs=[pl.BlockSpec((br, width), lambda i: (i, 0))],
            out_specs=pl.BlockSpec((br, width), lambda i: (i, 0)),
        ),
        compiler_params=pltpu.CompilerParams(
            dimension_semantics=("parallel",),
            vmem_limit_bytes=vmem_limit,
        ),
    )(x2d)


def scaled_tanh(x: jax.Array, factor: float = FACTOR, *,
                target_block_bytes: int = DEFAULT_BLOCK_BYTES,
                min_pallas_elems: int = TINY_BYPASS_ELEMS) -> jax.Array:
    orig_shape = x.shape
    dtype = x.dtype
    n = x.size

    # KB-scale arrays: fixed per-call + per-step overhead dominates; XLA's
    # fused elementwise is faster.  (min_pallas_elems=0 forces the kernel.)
    if n < max(1, min_pallas_elems):
        return (jnp.tanh(x) * factor).astype(dtype)

    sub = _min_sublane(dtype)
    flat = x.reshape(-1)

    if n % LANE == 0:
        width = _pick_width(n, sub)
        if width is None:   # can only happen with a forced tiny input
            return (jnp.tanh(x) * factor).astype(dtype)
        out2d = _scaled_tanh_2d(flat.reshape(n // width, width), factor,
                                target_block_bytes)
        return out2d.reshape(orig_shape)

    # Non-128-divisible: kernel on the 128-aligned prefix, plain jnp on the
    # <128-element tail.  Avoids the old full-array pad + full-output slice
    # (2 extra HBM passes) and any reliance on tanh(0) == 0.
    n_head = (n // LANE) * LANE
    width = _pick_width(n_head, sub)
    if n_head == 0 or width is None:
        return (jnp.tanh(x) * factor).astype(dtype)
    head = flat[:n_head]
    tail = flat[n_head:]
    out_head = _scaled_tanh_2d(head.reshape(n_head // width, width), factor,
                               target_block_bytes).reshape(-1)
    out_tail = (jnp.tanh(tail) * factor).astype(dtype)
    return jnp.concatenate([out_head, out_tail]).reshape(orig_shape)


if __name__ == "__main__":
    key = jax.random.PRNGKey(0)

    # Primary check: the module's NCHW use case.  Force the Pallas path so the
    # kernel itself is exercised on the spec shape (production default would
    # take the tiny-input bypass here).
    x = jax.random.normal(key, (2, 4, 16, 16), dtype=jnp.float32)
    y = scaled_tanh(x, FACTOR, min_pallas_elems=0)
    jax.block_until_ready(y)
    y_ref = jnp.tanh(x) * FACTOR
    assert y.shape == x.shape and y.dtype == x.dtype
    assert jnp.allclose(y, y_ref, atol=1e-6, rtol=1e-6)

    # Default path, multi-block grid (exercises megacore sharding + pipelining).
    x2 = jax.random.normal(jax.random.PRNGKey(1), (4, 16, 64, 64), dtype=jnp.float32)
    y2 = scaled_tanh(x2, FACTOR)
    jax.block_until_ready(y2)
    assert jnp.allclose(y2, jnp.tanh(x2) * FACTOR, atol=1e-6, rtol=1e-6)

    # Tiny-input bypass path (returns fused XLA elementwise).
    x3 = jax.random.normal(jax.random.PRNGKey(2), (3, 5, 7, 11), dtype=jnp.float32)
    y3 = scaled_tanh(x3, FACTOR)
    jax.block_until_ready(y3)
    assert jnp.allclose(y3, jnp.tanh(x3) * FACTOR, atol=1e-6, rtol=1e-6)

    # Large non-128-divisible path (kernel on aligned prefix + jnp tail).
    x4 = jax.random.normal(jax.random.PRNGKey(3), (3, 5, 67, 131), dtype=jnp.float32)
    y4 = scaled_tanh(x4, FACTOR)
    jax.block_until_ready(y4)
    assert jnp.allclose(y4, jnp.tanh(x4) * FACTOR, atol=1e-6, rtol=1e-6)

    # bf16 path (dtype-aware sublane rounding, no wrapper-side casts).
    x5 = jax.random.normal(jax.random.PRNGKey(4), (4, 16, 64, 64), dtype=jnp.bfloat16)
    y5 = scaled_tanh(x5, FACTOR)
    jax.block_until_ready(y5)
    assert y5.dtype == jnp.bfloat16
    assert jnp.allclose(y5.astype(jnp.float32),
                        (jnp.tanh(x5.astype(jnp.float32)) * FACTOR),
                        atol=2e-2, rtol=2e-2)

    print("KERNEL_OK")
</pallas_src>

<mosaic_0001>
module attributes {stable_mosaic.version = 11 : i64} {
  func.func @_scaled_tanh_kernel(%arg0: i32, %arg1: memref<8x256xf32, #tpu.memory_space<vmem>>, %arg2: memref<8x256xf32, #tpu.memory_space<vmem>>) attributes {dimension_semantics = [#tpu.dimension_semantics<parallel>], iteration_bounds = array<i64: 1>, scalar_prefetch = 0 : i64, scratch_operands = 0 : i64, tpu.core_type = #tpu.core_type<tc>, window_params = [{transform_indices = @transform_0, window_bounds = array<i64: 8, 256>}, {transform_indices = @transform_1, window_bounds = array<i64: 8, 256>}]} {
    %c0 = arith.constant 0 : index
    %c0_0 = arith.constant 0 : index
    %0 = vector.load %arg1[%c0, %c0_0] : memref<8x256xf32, #tpu.memory_space<vmem>>, vector<8x256xf32>
    %1 = math.tanh %0 : vector<8x256xf32>
    %cst = arith.constant 2.500000e+00 : f32
    %2 = vector.broadcast %cst : f32 to vector<8x256xf32>
    %3 = arith.mulf %1, %2 : vector<8x256xf32>
    %c0_1 = arith.constant 0 : index
    %c0_2 = arith.constant 0 : index
    %4 = vector.load %arg2[%c0_1, %c0_2] : memref<8x256xf32, #tpu.memory_space<vmem>>, vector<8x256xf32>
    tpu.vector_store %arg2[%c0_1, %c0_2], %3 {strides = array<i32>} : memref<8x256xf32, #tpu.memory_space<vmem>>, vector<8x256xf32>,
    return
  }
  func.func @transform_0(%arg0: i32) -> (i32, i32) {
    %c0_i32 = arith.constant 0 : i32
    %c0_i32_0 = arith.constant 0 : i32
    return %arg0, %c0_i32 : i32, i32
  }
  func.func @transform_1(%arg0: i32) -> (i32, i32) {
    %c0_i32 = arith.constant 0 : i32
    %c0_i32_0 = arith.constant 0 : i32
    return %arg0, %c0_i32 : i32, i32
  }
}

</mosaic_0001>

<bundles_post_ra>
// kernel: tpu_custom_call.1
= control target key start
LH: loop header
LB: loop body
LE: loop exit
PB: predicated region body
PF: predicated region fallthrough
CT: control target
= control target key end

     0   :  { %6 = vsyncpa [#allocation3], 0  ;;  %s134_s0 = inlined_call_operand.hbm [shape: f32[8,256], index: 0, kind: input, shape index: {}]   ;;  %s135_s1 = inlined_call_operand.hbm [shape: f32[8,256], index: 1, kind: output, shape index: {}]  }
   0x1   :  { %7 = vsyncpa [#allocation4], 0  ;;  %s98_s6 = smov [#allocation2]   ;;  %s50_s10 = scalar_lea.hbm %s134_s0, 256 }
   0x2   :  { %s14_s7 = sshll.u32 %s98_s6, 4  ;;  %p51_p0 = scmp.ne.s32.totalorder %s134_s0, %s50_s10  ;;  %s15_s7 = int_to_ptr.vmem [resolvable:$true] %s14_s7 }
   0x3   :  { %p54_p1 = scmp.lt.u32.totalorder %s50_s10, %s134_s0 }
   0x5   :  { %p56_p2 = pnand %p54_p1, %p51_p0 }
   0x7   :  { %59 = shalt.err (!%p56_p2)
}
   0x8   :  { %s60_s15 = scalar_lea.vmem %s15_s7, 256  ;;  %p65_p4 = scmp.lt.s32.totalorder %s15_s7, %s15_s7 }
   0x9   :  { %p61_p3 = scmp.ne.s32.totalorder %s15_s7, %s60_s15  ;;  %p66_p5 = scmp.lt.s32.totalorder %s60_s15, %s60_s15 }
   0xb   :  { %p67_p6 = por %p66_p5, %p65_p4 }
   0xd   :  { %p68_p7 = pnand %p67_p6, %p61_p3 }
   0xf   :  { %71 = shalt.err (!%p68_p7)
}
  0x10   :  { %17 = dma.hbm_to_vmem [thread:$0]  %s134_s0, 256, %s15_s7, [#allocation3]  }
  0x11   :  { %94 = dma.done.wait [#allocation3], 256  }
  0x12   :  { %95 = vsyncadd [#allocation3], 4294967040  ;;  %v21_v0 = vld [vmem:[#allocation2] sm:$0xff]  ;;  %v22_v1 = vld [vmem:[#allocation2 + $0x8] sm:$0xff]  ;;  %s99_s18 = smov [#allocation5]  }
  0x13   :  { %46 = vtanh.f32 %v21_v0  ;;  %s35_s19 = sshll.u32 %s99_s18, 4  ;;  %s36_s19 = int_to_ptr.vmem [resolvable:$true] %s35_s19 }
  0x14   :  { %48 = vtanh.f32 %v22_v1  ;;  %s72_s20 = scalar_lea.vmem %s36_s19, 256  ;;  %p77_p9 = scmp.lt.s32.totalorder %s36_s19, %s36_s19 }
  0x15   :  { %p73_p8 = scmp.ne.s32.totalorder %s36_s19, %s72_s20  ;;  %p78_p10 = scmp.lt.s32.totalorder %s72_s20, %s72_s20 }
  0x17   :  { %p79_p11 = por %p78_p10, %p77_p9 }
  0x19   :  { %p80_p12 = pnand %p79_p11, %p73_p8 }
  0x1d   :  { %v47_v2 = vpop.eup %46 }
  0x1e   :  { %v49_v3 = vpop.eup %48  ;;  %v25_v4 = vmul.f32 2.5, %v47_v2 }
  0x1f   :  { %v26_v5 = vmul.f32 2.5, %v49_v3 }
  0x20   :  { %27 = vst [vmem:[#allocation5] sm:$0xff] %v25_v4 }
  0x21   :  { %28 = vst [vmem:[#allocation5 + $0x8] sm:$0xff] %v26_v5 }
  0x22   :  { %83 = shalt.err (!%p80_p12)
}
  0x23   :  { %s84_s22 = scalar_lea.hbm %s135_s1, 256 }
  0x24   :  { %p85_p13 = scmp.ne.s32.totalorder %s135_s1, %s84_s22  ;;  %p88_p0 = scmp.lt.u32.totalorder %s84_s22, %s135_s1 }
  0x26   :  { %p90_p1 = pnand %p88_p0, %p85_p13 }
  0x28   :  { %93 = shalt.err (!%p90_p1)
}
  0x29   :  { %38 = dma.vmem_to_hbm [thread:$0]  %s36_s19, 256, %s135_s1, [#allocation4]  }
  0x2a   :  { %96 = dma.done.wait [#allocation4], 256  }
  0x2b   :  { %97 = vsyncadd [#allocation4], 4294967040 }
  0x2c   :  { %42 = vsyncpa [#allocation3], 1 }
  0x2d   :  { %43 = vsyncpa [#allocation4], 1 }

</bundles_post_ra>
